<compile_context>
chip_gen: v7x
topology: tpu7x:2x2x1
jax: 0.10.0
libtpu: 0.0.40
codegen_flags: <defaults>
</compile_context>

<pallas_src>
import jax
import jax.numpy as jnp
import numpy as np
from jax.experimental import pallas as pl
from jax.experimental.pallas import tpu as pltpu


_VMEM = pl.BlockSpec(memory_space=pltpu.MemorySpace.VMEM)


# ----------------------------------------------------------------------------
# In-kernel helpers
# ----------------------------------------------------------------------------
def _elu(h):
    """ELU(alpha=1) with a single transcendental: expm1(x) ~= exp(min(x,0))-1
    (min-clamp keeps exp from overflowing on the discarded positive branch)."""
    hn = jnp.minimum(h, 0.0)
    return jnp.where(h > 0, h, jnp.exp(hn) - 1.0)


def _masks(t, y):
    m00 = (1.0 - t) * (1.0 - y)
    m01 = (1.0 - t) * y
    m10 = t * (1.0 - y)
    m11 = t * y
    return m00, m01, m10, m11


def _pack_exp_store(out_ref, h, z_dim):
    """Single full-block store: first z_dim columns as-is, rest exp()'d."""
    col = jax.lax.broadcasted_iota(jnp.int32, h.shape, 1)
    out_ref[...] = jnp.where(col < z_dim, h, jnp.exp(h))


# ----------------------------------------------------------------------------
# Fused kernels (one pallas_call per Encoder branch)
# ----------------------------------------------------------------------------
def _make_default_linear_kernel(z_dim):
    """binary_t_y=False, q_z_xty_nn=False.
    Weights are packed at init: Wx/wt/wy have 2*z_dim cols ([W | 0]) and the
    bias is [b | logstd], so h[:, z:] == logstd (broadcast) and one exp
    finishes z_std."""

    def kernel(x_ref, t_ref, y_ref, wx_ref, wt_ref, wy_ref, b_ref, out_ref):
        h = (
            jnp.dot(x_ref[...], wx_ref[...],
                    preferred_element_type=jnp.float32)
            + t_ref[...] * wt_ref[...]
            + y_ref[...] * wy_ref[...]
            + b_ref[...]
        )
        _pack_exp_store(out_ref, h, z_dim)

    return kernel


def _make_default_mlp_kernel(n_layers, widths, z_dim):
    """binary_t_y=False, q_z_xty_nn=True: FullyConnected MLP on cat([x,t,y])
    with the first-layer weight pre-split (no in-kernel sublane slicing) and
    all biases packed into one (n_layers, max_width) ref."""

    def kernel(*refs):
        x_ref, t_ref, y_ref, w0x_ref, w0t_ref, w0y_ref = refs[:6]
        w_rest = refs[6:6 + n_layers - 1]
        b_ref = refs[6 + n_layers - 1]
        out_ref = refs[-1]
        h = (
            jnp.dot(x_ref[...], w0x_ref[...],
                    preferred_element_type=jnp.float32)
            + t_ref[...] * w0t_ref[...]
            + y_ref[...] * w0y_ref[...]
            + b_ref[0:1, :widths[0]]
        )
        for i in range(1, n_layers):
            h = _elu(h)
            h = (jnp.dot(h, w_rest[i - 1][...],
                         preferred_element_type=jnp.float32)
                 + b_ref[i:i + 1, :widths[i]])
        # h: (B, 2*z_dim); first half -> z_pred, second half -> exp() = z_std
        _pack_exp_store(out_ref, h, z_dim)

    return kernel


def _make_binary_linear_kernel(z_dim):
    """binary_t_y=True, q_z_xty_nn=False: the 4 per-(t,y) Linear layers are
    pre-merged into one (input_dim, 4*2*z_dim) weight (each branch padded to
    [W_b | 0] with bias [b_b | logstd_b]) -> single matmul, per-row indicator
    blend over 2*z_dim groups, single packed store."""

    def kernel(x_ref, t_ref, y_ref, w_ref, b_ref, out_ref):
        m00, m01, m10, m11 = _masks(t_ref[...], y_ref[...])
        h = (jnp.dot(x_ref[...], w_ref[...],
                     preferred_element_type=jnp.float32) + b_ref[...])
        g = 2 * z_dim
        z_res = (h[:, 0:g] * m00 + h[:, g:2 * g] * m01
                 + h[:, 2 * g:3 * g] * m10 + h[:, 3 * g:4 * g] * m11)
        _pack_exp_store(out_ref, z_res, z_dim)

    return kernel


def _make_binary_mlp_kernel(n_layers, widths, z_dim):
    """binary_t_y=True, q_z_xty_nn=True: the four per-(t,y) MLPs run as ONE
    matmul chain using merged weights (first layer concat-out, deeper layers
    block-diagonal); biases packed into one ref; per-row masks blend the
    per-branch 2*z_dim groups; single packed store."""

    def kernel(*refs):
        x_ref, t_ref, y_ref = refs[:3]
        w_refs = refs[3:3 + n_layers]
        b_ref = refs[3 + n_layers]
        out_ref = refs[-1]
        m00, m01, m10, m11 = _masks(t_ref[...], y_ref[...])
        h = x_ref[...]
        for i in range(n_layers):
            h = (jnp.dot(h, w_refs[i][...],
                         preferred_element_type=jnp.float32)
                 + b_ref[i:i + 1, :widths[i]])
            if i < n_layers - 1:
                h = _elu(h)
        # h: (B, 4*2*z_dim), branch order [t0y0, t0y1, t1y0, t1y1]
        g = 2 * z_dim
        z_res = (h[:, 0:g] * m00 + h[:, g:2 * g] * m01
                 + h[:, 2 * g:3 * g] * m10 + h[:, 3 * g:4 * g] * m11)
        _pack_exp_store(out_ref, z_res, z_dim)

    return kernel


# ----------------------------------------------------------------------------
# Wrappers (one pallas_call each, packed (B, 2*z_dim) output)
# ----------------------------------------------------------------------------
def _cost_estimate(args, ws, hidden_widths, z_dim, B):
    flops = 2 * B * sum(int(w.shape[0]) * int(w.shape[1]) for w in ws)
    # ELU now costs 1 transcendental/elem; +1 exp per output column.
    transcendentals = B * (sum(int(h) for h in hidden_widths) + z_dim)
    bytes_accessed = 4 * (sum(int(a.size) for a in args) + B * 2 * z_dim)
    return pl.CostEstimate(flops=flops, transcendentals=transcendentals,
                           bytes_accessed=bytes_accessed)


def _call(kernel, args, B, z_dim, ce):
    out = pl.pallas_call(
        kernel,
        out_shape=jax.ShapeDtypeStruct((B, 2 * z_dim), jnp.float32),
        in_specs=[_VMEM] * len(args),
        out_specs=_VMEM,
        cost_estimate=ce,
    )(*args)
    return out[:, :z_dim], out[:, z_dim:]


def default_linear_forward(x, t, y, wx, wt, wy, b, z_dim):
    B = x.shape[0]
    args = [x, t, y, wx, wt, wy, b]
    ce = _cost_estimate(args, [wx], [], z_dim, B)
    return _call(_make_default_linear_kernel(z_dim), args, B, z_dim, ce)


def default_mlp_forward(x, t, y, w0x, w0t, w0y, ws_rest, b_pack, widths,
                        z_dim):
    B = x.shape[0]
    n_layers = len(widths)
    args = [x, t, y, w0x, w0t, w0y] + list(ws_rest) + [b_pack]
    ce = _cost_estimate(args, [w0x] + list(ws_rest), widths[:-1], z_dim, B)
    return _call(_make_default_mlp_kernel(n_layers, widths, z_dim),
                 args, B, z_dim, ce)


def binary_linear_forward(x, t, y, w_cat, b_cat, z_dim):
    B = x.shape[0]
    args = [x, t, y, w_cat, b_cat]
    ce = _cost_estimate(args, [w_cat], [], z_dim, B)
    return _call(_make_binary_linear_kernel(z_dim), args, B, z_dim, ce)


def binary_mlp_forward(x, t, y, ws, b_pack, widths, z_dim):
    B = x.shape[0]
    n_layers = len(widths)
    args = [x, t, y] + list(ws) + [b_pack]
    ce = _cost_estimate(args, ws, widths[:-1], z_dim, B)
    return _call(_make_binary_mlp_kernel(n_layers, widths, z_dim),
                 args, B, z_dim, ce)


# ----------------------------------------------------------------------------
# Parameter construction / merging (synthetic weights; no checkpoints)
# ----------------------------------------------------------------------------
def _linear_params(key, in_dim, out_dim, scale=0.1):
    kw, kb = jax.random.split(key)
    w = scale * jax.random.normal(kw, (in_dim, out_dim), jnp.float32)
    b = scale * jax.random.normal(kb, (1, out_dim), jnp.float32)
    return w, b


def _fc_params(key, sizes):
    ws, bs = [], []
    for din, dout in zip(sizes, sizes[1:]):
        key, sub = jax.random.split(key)
        w, b = _linear_params(sub, din, dout)
        ws.append(w)
        bs.append(b)
    return ws, bs


def _block_diag(mats):
    rows = sum(m.shape[0] for m in mats)
    cols = sum(m.shape[1] for m in mats)
    out = jnp.zeros((rows, cols), jnp.float32)
    r = c = 0
    for m in mats:
        out = out.at[r:r + m.shape[0], c:c + m.shape[1]].set(m)
        r += m.shape[0]
        c += m.shape[1]
    return out


def _merge_branch_mlps(branches):
    """branches: list of 4 (ws, bs) with identical layer sizes.
    Layer 0 -> concat along output dim; deeper layers -> block-diagonal."""
    n_layers = len(branches[0][0])
    ws, bs = [], []
    for li in range(n_layers):
        layer_ws = [br[0][li] for br in branches]
        layer_bs = [br[1][li] for br in branches]
        if li == 0:
            ws.append(jnp.concatenate(layer_ws, axis=1))
        else:
            ws.append(_block_diag(layer_ws))
        bs.append(jnp.concatenate(layer_bs, axis=1))
    return ws, bs


def _pack_biases(bs):
    """Pack per-layer (1, w_i) biases into one (n_layers, max_w) array."""
    widths = [int(b.shape[1]) for b in bs]
    maxw = max(widths)
    pack = jnp.zeros((len(bs), maxw), jnp.float32)
    for i, b in enumerate(bs):
        pack = pack.at[i, :widths[i]].set(b[0])
    return pack, widths


class EncoderPallas:
    """JAX/Pallas re-implementation of the PyTorch Encoder forward pass."""

    def __init__(self, input_dim, hidden_dim, num_hidden, z_dim=1,
                 binary_t_y=False, q_z_xty_nn=False, key=None):
        if key is None:
            key = jax.random.PRNGKey(0)
        self.input_dim = input_dim
        self.z_dim = z_dim
        self.binary_t_y = binary_t_y
        self.q_z_xty_nn = q_z_xty_nn
        z = z_dim

        keys = jax.random.split(key, 12)
        # --- unmerged reference parameters -----------------------------------
        # q_z_nn : Linear(input_dim + 2, z_dim);  z_logstd : ones(z_dim)
        self.q_z_nn = _linear_params(keys[0], input_dim + 2, z)
        self.z_logstd = jnp.ones((1, z), jnp.float32)
        # q_z_nn_real : FullyConnected([input_dim+2] + num_hidden*[H] + [2*z])
        self.q_z_nn_real = _fc_params(
            keys[1], [input_dim + 2] + num_hidden * [hidden_dim] + [z * 2])
        # per-(t,y) linears + logstds
        self.q_z_nn_t0y0 = _linear_params(keys[2], input_dim, z)
        self.q_z_nn_t0y1 = _linear_params(keys[3], input_dim, z)
        self.q_z_nn_t1y0 = _linear_params(keys[4], input_dim, z)
        self.q_z_nn_t1y1 = _linear_params(keys[5], input_dim, z)
        self.z_logstd_t0y0 = jnp.ones((1, z), jnp.float32)
        self.z_logstd_t0y1 = jnp.ones((1, z), jnp.float32)
        self.z_logstd_t1y0 = jnp.ones((1, z), jnp.float32)
        self.z_logstd_t1y1 = jnp.ones((1, z), jnp.float32)
        # per-(t,y) MLPs
        fc_sizes = [input_dim] + num_hidden * [hidden_dim] + [z * 2]
        self.q_z_nn_t0y0_real = _fc_params(keys[6], fc_sizes)
        self.q_z_nn_t0y1_real = _fc_params(keys[7], fc_sizes)
        self.q_z_nn_t1y0_real = _fc_params(keys[8], fc_sizes)
        self.q_z_nn_t1y1_real = _fc_params(keys[9], fc_sizes)

        # --- packed / merged parameters for the fused kernels ----------------
        zpad = jnp.zeros((input_dim, z), jnp.float32)
        rpad = jnp.zeros((1, z), jnp.float32)

        # default linear: [W | 0] split by rows, bias [b | logstd]
        w, b = self.q_z_nn
        self._dl_wx = jnp.concatenate([w[:input_dim], zpad], axis=1)
        self._dl_wt = jnp.concatenate([w[input_dim:input_dim + 1], rpad], axis=1)
        self._dl_wy = jnp.concatenate([w[input_dim + 1:input_dim + 2], rpad], axis=1)
        self._dl_b = jnp.concatenate([b, self.z_logstd], axis=1)

        # default MLP: first-layer weight pre-split, biases packed
        ws, bs = self.q_z_nn_real
        w0 = ws[0]
        self._dm_w0x = w0[:input_dim]
        self._dm_w0t = w0[input_dim:input_dim + 1]
        self._dm_w0y = w0[input_dim + 1:input_dim + 2]
        self._dm_ws_rest = ws[1:]
        self._dm_b_pack, self._dm_widths = _pack_biases(bs)

        # binary linear: per-branch [W_b | 0] / [b_b | logstd_b], concat cols
        lin_branches = [
            (self.q_z_nn_t0y0, self.z_logstd_t0y0),
            (self.q_z_nn_t0y1, self.z_logstd_t0y1),
            (self.q_z_nn_t1y0, self.z_logstd_t1y0),
            (self.q_z_nn_t1y1, self.z_logstd_t1y1),
        ]
        self._bl_w = jnp.concatenate(
            [jnp.concatenate([wb, zpad], axis=1) for (wb, _), _ in lin_branches],
            axis=1)
        self._bl_b = jnp.concatenate(
            [jnp.concatenate([bb, ls], axis=1) for (_, bb), ls in lin_branches],
            axis=1)

        # binary MLP: merged weights + packed biases
        m_ws, m_bs = _merge_branch_mlps(
            [self.q_z_nn_t0y0_real, self.q_z_nn_t0y1_real,
             self.q_z_nn_t1y0_real, self.q_z_nn_t1y1_real])
        self._bm_ws = m_ws
        self._bm_b_pack, self._bm_widths = _pack_biases(m_bs)

    def __call__(self, x, t, y):
        z = self.z_dim
        if self.binary_t_y:
            if self.q_z_xty_nn:
                return binary_mlp_forward(x, t, y, self._bm_ws,
                                          self._bm_b_pack, self._bm_widths, z)
            return binary_linear_forward(x, t, y, self._bl_w, self._bl_b, z)
        else:
            if self.q_z_xty_nn:
                return default_mlp_forward(x, t, y, self._dm_w0x, self._dm_w0t,
                                           self._dm_w0y, self._dm_ws_rest,
                                           self._dm_b_pack, self._dm_widths, z)
            return default_linear_forward(x, t, y, self._dl_wx, self._dl_wt,
                                          self._dl_wy, self._dl_b, z)


# ----------------------------------------------------------------------------
# Pure-JAX reference (uses the UNMERGED parameters)
# ----------------------------------------------------------------------------
def _ref_fc(x, ws, bs):
    h = x
    for i, (w, b) in enumerate(zip(ws, bs)):
        h = h @ w + b
        if i < len(ws) - 1:
            h = jax.nn.elu(h)
    return h


def _ref_forward(enc, x, t, y):
    z = enc.z_dim
    if enc.binary_t_y:
        m00 = (1 - t) * (1 - y); m01 = (1 - t) * y
        m10 = t * (1 - y); m11 = t * y
        if enc.q_z_xty_nn:
            h = (_ref_fc(x, *enc.q_z_nn_t0y0_real) * m00
                 + _ref_fc(x, *enc.q_z_nn_t0y1_real) * m01
                 + _ref_fc(x, *enc.q_z_nn_t1y0_real) * m10
                 + _ref_fc(x, *enc.q_z_nn_t1y1_real) * m11)
            return h[:, :z], jnp.exp(h[:, z:])
        def lin(p): return x @ p[0] + p[1]
        z_pred = (lin(enc.q_z_nn_t0y0) * m00 + lin(enc.q_z_nn_t0y1) * m01
                  + lin(enc.q_z_nn_t1y0) * m10 + lin(enc.q_z_nn_t1y1) * m11)
        logstd = (enc.z_logstd_t0y0 * m00 + enc.z_logstd_t0y1 * m01
                  + enc.z_logstd_t1y0 * m10 + enc.z_logstd_t1y1 * m11)
        return z_pred, jnp.exp(logstd)
    xty = jnp.concatenate([x, t, y], axis=1)
    if enc.q_z_xty_nn:
        h = _ref_fc(xty, *enc.q_z_nn_real)
        return h[:, :z], jnp.exp(h[:, z:])
    w, b = enc.q_z_nn
    return xty @ w + b, jnp.broadcast_to(jnp.exp(enc.z_logstd),
                                         (x.shape[0], z))


# ----------------------------------------------------------------------------
# Main
# ----------------------------------------------------------------------------
if __name__ == "__main__":
    B, input_dim, hidden_dim, num_hidden, z_dim = 8, 6, 32, 2, 1

    key = jax.random.PRNGKey(0)
    kx, kt, ky, kp = jax.random.split(key, 4)
    x = jax.random.normal(kx, (B, input_dim), jnp.float32)
    t_cont = jax.random.normal(kt, (B, 1), jnp.float32)
    y_cont = jax.random.normal(ky, (B, 1), jnp.float32)
    t_bin = jax.random.bernoulli(kt, 0.5, (B, 1)).astype(jnp.float32)
    y_bin = jax.random.bernoulli(ky, 0.5, (B, 1)).astype(jnp.float32)

    for binary_t_y, q_z_xty_nn in [(False, False), (False, True),
                                   (True, False), (True, True)]:
        enc = EncoderPallas(input_dim, hidden_dim, num_hidden, z_dim=z_dim,
                            binary_t_y=binary_t_y, q_z_xty_nn=q_z_xty_nn,
                            key=kp)
        tt, yy = (t_bin, y_bin) if binary_t_y else (t_cont, y_cont)
        z_pred, z_std = jax.block_until_ready(enc(x, tt, yy))
        assert z_pred.shape == (B, z_dim) and z_std.shape == (B, z_dim)
        ref_pred, ref_std = _ref_forward(enc, x, tt, yy)
        np.testing.assert_allclose(np.asarray(z_pred), np.asarray(ref_pred),
                                   rtol=2e-3, atol=2e-3)
        np.testing.assert_allclose(np.asarray(z_std), np.asarray(ref_std),
                                   rtol=2e-3, atol=2e-3)

    print("KERNEL_OK")
</pallas_src>

<mosaic_0001>
module attributes {stable_mosaic.version = 11 : i64} {
  func.func @kernel(%arg0: memref<8x6xf32, #tpu.memory_space<vmem>>, %arg1: memref<8x1xf32, #tpu.memory_space<vmem>>, %arg2: memref<8x1xf32, #tpu.memory_space<vmem>>, %arg3: memref<6x2xf32, #tpu.memory_space<vmem>>, %arg4: memref<1x2xf32, #tpu.memory_space<vmem>>, %arg5: memref<1x2xf32, #tpu.memory_space<vmem>>, %arg6: memref<1x2xf32, #tpu.memory_space<vmem>>, %arg7: memref<8x2xf32, #tpu.memory_space<vmem>>) attributes {dimension_semantics = [], scalar_prefetch = 0 : i64, scratch_operands = 0 : i64, tpu.core_type = #tpu.core_type<tc>} {
    %c0 = arith.constant 0 : index
    %c0_0 = arith.constant 0 : index
    %0 = vector.load %arg0[%c0, %c0_0] : memref<8x6xf32, #tpu.memory_space<vmem>>, vector<8x6xf32>
    %c0_1 = arith.constant 0 : index
    %c0_2 = arith.constant 0 : index
    %1 = vector.load %arg3[%c0_1, %c0_2] : memref<6x2xf32, #tpu.memory_space<vmem>>, vector<6x2xf32>
    %cst = arith.constant dense<0.000000e+00> : vector<8x2xf32>
    %2 = tpu.matmul %0, %1, %cst {dimension_numbers = #tpu.dot_dimension_numbers<[1], [0], [0], [1], [0, 0, 1, 1], [], []>} : vector<8x6xf32>, vector<6x2xf32>, vector<8x2xf32> -> vector<8x2xf32>
    %c0_3 = arith.constant 0 : index
    %c0_4 = arith.constant 0 : index
    %3 = vector.load %arg1[%c0_3, %c0_4] : memref<8x1xf32, #tpu.memory_space<vmem>>, vector<8x1xf32>
    %c0_5 = arith.constant 0 : index
    %c0_6 = arith.constant 0 : index
    %4 = vector.load %arg4[%c0_5, %c0_6] : memref<1x2xf32, #tpu.memory_space<vmem>>, vector<1x2xf32>
    %5 = vector.broadcast %3 : vector<8x1xf32> to vector<8x2xf32>
    %6 = vector.broadcast %4 : vector<1x2xf32> to vector<8x2xf32>
    %7 = arith.mulf %5, %6 : vector<8x2xf32>
    %8 = arith.addf %2, %7 : vector<8x2xf32>
    %c0_7 = arith.constant 0 : index
    %c0_8 = arith.constant 0 : index
    %9 = vector.load %arg2[%c0_7, %c0_8] : memref<8x1xf32, #tpu.memory_space<vmem>>, vector<8x1xf32>
    %c0_9 = arith.constant 0 : index
    %c0_10 = arith.constant 0 : index
    %10 = vector.load %arg5[%c0_9, %c0_10] : memref<1x2xf32, #tpu.memory_space<vmem>>, vector<1x2xf32>
    %11 = vector.broadcast %9 : vector<8x1xf32> to vector<8x2xf32>
    %12 = vector.broadcast %10 : vector<1x2xf32> to vector<8x2xf32>
    %13 = arith.mulf %11, %12 : vector<8x2xf32>
    %14 = arith.addf %8, %13 : vector<8x2xf32>
    %c0_11 = arith.constant 0 : index
    %c0_12 = arith.constant 0 : index
    %15 = vector.load %arg6[%c0_11, %c0_12] : memref<1x2xf32, #tpu.memory_space<vmem>>, vector<1x2xf32>
    %16 = vector.broadcast %15 : vector<1x2xf32> to vector<8x2xf32>
    %17 = arith.addf %14, %16 : vector<8x2xf32>
    %18 = tpu.iota {dimensions = array<i32: 1>} : vector<8x2xi32>
    %c1_i32 = arith.constant 1 : i32
    %19 = vector.broadcast %c1_i32 : i32 to vector<8x2xi32>
    %20 = arith.cmpi slt, %18, %19 : vector<8x2xi32>
    %21 = math.exp %17 : vector<8x2xf32>
    %22 = arith.select %20, %17, %21 : vector<8x2xi1>, vector<8x2xf32>
    %c0_13 = arith.constant 0 : index
    %c0_14 = arith.constant 0 : index
    %23 = vector.load %arg7[%c0_13, %c0_14] : memref<8x2xf32, #tpu.memory_space<vmem>>, vector<8x2xf32>
    tpu.vector_store %arg7[%c0_13, %c0_14], %22 {strides = array<i32>} : memref<8x2xf32, #tpu.memory_space<vmem>>, vector<8x2xf32>,
    return
  }
}

</mosaic_0001>

<bundles_post_ra>
// kernel: tpu_custom_call.1
= control target key start
LH: loop header
LB: loop body
LE: loop exit
PB: predicated region body
PF: predicated region fallthrough
CT: control target
= control target key end

     0   :  { %vm46_vm0 = vcmask 1045504   ;;  %vm42_vm1 = vcmask 48128   ;;  %v173_v0 = vmov 0.0   ;;  %vm174_vm2 = vmmov 0   ;;  %s240_s3 = inlined_call_operand.vmem [shape: f32[6,2], index: 3, kind: input, shape index: {}]   ;;  %s241_s0 = inlined_call_operand.vmem [shape: f32[8,6], index: 0, kind: input, shape index: {}]   ;;  %s242_s1 = inlined_call_operand.vmem [shape: f32[8,1], index: 1, kind: input, shape index: {}]   ;;  %s243_s2 = inlined_call_operand.vmem [shape: f32[8,1], index: 2, kind: input, shape index: {}]   ;;  %s244_s4 = inlined_call_operand.vmem [shape: f32[1,2], index: 4, kind: input, shape index: {}]   ;;  %s245_s5 = inlined_call_operand.vmem [shape: f32[1,2], index: 5, kind: input, shape index: {}]   ;;  %s246_s6 = inlined_call_operand.vmem [shape: f32[1,2], index: 6, kind: input, shape index: {}]   ;;  %s247_s7 = inlined_call_operand.vmem [shape: f32[8,2], index: 7, kind: output, shape index: {}]  }
   0x1   :  { %162 = vmatprep.subr.mxu0 %v173_v0  ;;  %v27_v1 = vld [vmem:[%s240_s3] sm:$0x3f]  ;;  %164 = vmatprep.mubr.msk.f32.mxu0 %vm174_vm2, %v173_v0  ;;  %v175_v4 = vmov 0   ;;  %v143_v19 = vlaneseq  ;;  %vm149_vm4 = vcmask 15360  }
   0x2   :  { %v26_v2 = vld [vmem:[%s241_s0] sm:$0xff]  ;;  %163 = vmatpush3.msk.msra.mxu0 %vm46_vm0, %v27_v1  ;;  %170 = vset.pattern.permute.xlu0 %v175_v4 }
   0x3   :  { %v28_v3 = vld [vmem:[%s242_s1] sm:$0xff]  ;;  %165 = vmatmul.mubr.msk.f32.vlgmr.msra.gmra.mrb[0].mxu0 %vm42_vm1, %v26_v2  ;;  %v144_v20 = vand.u32 127, %v143_v19 }
   0x4   :  { %32 = vperm.xlu0 %170, %v28_v3   ;;  %v120_v5 = vld [vmem:[%s243_s2] sm:$0xff] }
   0x5   :  { %v155_v7 = vld [vmem:[%s244_s4] ss:$0 sm:$0xff]  ;;  %vm145_vm3 = vcmp.lt.s32.totalorder %v144_v20, 1 }
   0x6   :  { %v158_v8 = vld [vmem:[%s245_s5] ss:$0 sm:$0xff] }
   0x7   :  { %v159_v15 = vld [vmem:[%s246_s6] ss:$0 sm:$0xff] }
   0x8   :  { %124 = vperm.xlu0 %170, %v120_v5  }
  0x83   :  { %v33_v6 = vpop.permute.xlu0 %32 }
  0x84   :  { %v41_v10 = vmul.f32 %v155_v7, %v33_v6 }
  0x87   :  { %v125_v9 = vpop.permute.xlu0 %124 }
  0x88   :  { %v133_v12 = vmul.f32 %v158_v8, %v125_v9 }
  0xd6   :  { %v116_v11 = vpop.f32.mrb[0].mxu0 }
  0xd7   :  { %v117_v13 = vadd.f32 %v116_v11, %v41_v10  ;;  %v166_v14 = vpop.f32.mrb[1].mxu0 }
  0xd9   :  { %v134_v16 = vadd.f32 %v133_v12, %v117_v13 }
  0xdb   :  { %v142_v17 = vadd.f32 %v159_v15, %v134_v16 }
  0xdd   :  { %v146_v18 = vmul.f32 1.442695, %v142_v17 }
  0xdf   :  { %171 = vpow2.f32 %v146_v18 }
  0xe9   :  { %v172_v21 = vpop.eup %171 }
  0xea   :  { %v148_v22 = vsel %vm145_vm3, %v142_v17, %v172_v21 }
  0xeb   :  { %150 = vst.msk [vmem:[%s247_s7] sm:$0xff] %vm149_vm4, %v148_v22 }

</bundles_post_ra>
